<compile_context>
chip_gen: v7x
topology: tpu7x:2x2x1
jax: 0.10.0
libtpu: 0.0.40
codegen_flags: <defaults>
</compile_context>

<pallas_src>
import jax
import jax.numpy as jnp
from jax.experimental import pallas as pl
from jax.experimental.pallas import tpu as pltpu


# Python-float constants (NOT jnp arrays: closed-over jax Arrays become
# "captured constants" that pallas_call rejects).
_MASK_FILL = -1.0e9     # matches torch masked_fill value
_NEG_BIG = -2.0e38      # "minus infinity" that stays finite / safe in f32 math


def _round_up(x, m):
    return ((x + m - 1) // m) * m


def _make_kernel(*, temperature, lk, tk, has_mask, use_pad_mask):
    scale = 1.0 / float(temperature)   # Python float -> literal inside the kernel

    def kernel(*refs):
        if has_mask:
            q_ref, k_ref, v_ref, mask_ref, o_ref, m_sc, l_sc, acc_sc = refs
        else:
            q_ref, k_ref, v_ref, o_ref, m_sc, l_sc, acc_sc = refs
            mask_ref = None

        ki = pl.program_id(2)
        last_ki = pl.num_programs(2) - 1

        # ---- init accumulators at the start of the Lk reduction -------------
        @pl.when(ki == 0)
        def _():
            m_sc[...] = jnp.full_like(m_sc, _NEG_BIG)
            l_sc[...] = jnp.zeros_like(l_sc)
            acc_sc[...] = jnp.zeros_like(acc_sc)

        # Fold the 1/temperature scale into the (TQ, D) q tile (native dtype)
        # instead of the (TQ, TK) f32 scores: D/TK fewer VPU multiplies.
        q = q_ref[0] * scale      # (TQ, D)
        k = k_ref[0]              # (TK, D)
        v = v_ref[0]              # (TK, Dv)

        # scores = (q/temperature) @ k^T -- contract last dims (no materialized
        # k.T / XLU transpose), f32 MXU accumulation.
        scores = jax.lax.dot_general(
            q, k,
            dimension_numbers=(((1,), (1,)), ((), ())),
            preferred_element_type=jnp.float32,
        )                                                     # (TQ, TK) f32

        if has_mask:
            # int8 mask tile (1 B/elem DMA); broadcast over TQ if (1, TK).
            scores = jnp.where(mask_ref[0] != 0, scores, _MASK_FILL)

        if use_pad_mask:
            # Only the last Lk tile contains padded key columns; gate the
            # iota/compare/select so every other ki step pays nothing.
            def _mask_pad(s):
                col = ki * tk + jax.lax.broadcasted_iota(jnp.int32, s.shape, 1)
                return jnp.where(col < lk, s, _NEG_BIG)

            scores = jax.lax.cond(ki == last_ki, _mask_pad, lambda s: s, scores)

        # ---- online softmax update ------------------------------------------
        m_prev = m_sc[...]                                    # (TQ, 1)
        m_new = jnp.maximum(m_prev, jnp.max(scores, axis=-1, keepdims=True))
        alpha = jnp.exp(m_prev - m_new)
        # TODO(synk): on v6e/v7x a bf16 exp (with f32 m/l bookkeeping) would
        # offload the EUP when D is small.
        p = jnp.exp(scores - m_new)                           # (TQ, TK) f32

        l_sc[...] = alpha * l_sc[...] + jnp.sum(p, axis=-1, keepdims=True)
        acc_sc[...] = alpha * acc_sc[...] + jax.lax.dot_general(
            p.astype(v.dtype), v,
            dimension_numbers=(((1,), (0,)), ((), ())),
            preferred_element_type=jnp.float32,
        )
        m_sc[...] = m_new

        # ---- finalize on the last Lk tile ------------------------------------
        @pl.when(ki == last_ki)
        def _():
            l = l_sc[...]
            inv = pl.reciprocal(l, approx=True)
            inv = inv * (2.0 - l * inv)   # one Newton step: ~f32-exact, (TQ,1) cost
            o_ref[0] = (acc_sc[...] * inv).astype(o_ref.dtype)

    return kernel


def attention(q, k, v, mask=None, *, temperature, tq=256, tk=1024,
              mxu_dtype=jnp.bfloat16):
    """Flash-style Pallas scaled dot-product attention.

    q: (B, Lq, D), k: (B, Lk, D), v: (B, Lk, Dv),
    mask: (B, Lq, Lk) or (B, 1, Lk) or None.  Returns (B, Lq, Dv) in q.dtype.

    mxu_dtype=jnp.bfloat16 (default) casts f32 q/k/v to bf16 for the MXU
    (halves DMA, native-speed MXU); softmax math stays f32.  Pass
    mxu_dtype=None for strict f32 parity with the torch reference.
    """
    B, Lq, D = q.shape
    _, Lk, Dv = v.shape
    orig_dtype = q.dtype

    if (mxu_dtype is not None and jnp.dtype(orig_dtype) == jnp.float32
            and jnp.dtype(mxu_dtype) == jnp.bfloat16):
        q = q.astype(jnp.bfloat16)
        k = k.astype(jnp.bfloat16)
        v = v.astype(jnp.bfloat16)
    compute_dtype = q.dtype

    # Tile sizes aligned to the dtype-native sublane tile / lane width.
    sublane = 16 if compute_dtype == jnp.bfloat16 else 8
    TQ = min(tq, _round_up(Lq, sublane))
    if B == 1:
        # v7x megacore: keep at least 2 q tiles so both TensorCores get work.
        TQ = min(TQ, max(sublane, _round_up(-(-Lq // 2), sublane)))
    TK = min(tk, _round_up(Lk, 128))
    Lq_p = _round_up(Lq, TQ)
    Lk_p = _round_up(Lk, TK)

    def pad_axis(x, axis, target):
        pad = target - x.shape[axis]
        if pad == 0:
            return x
        widths = [(0, 0)] * x.ndim
        widths[axis] = (0, pad)
        return jnp.pad(x, widths)

    q_p = pad_axis(q, 1, Lq_p)
    k_p = pad_axis(k, 1, Lk_p)
    v_p = pad_axis(v, 1, Lk_p)

    has_mask = mask is not None
    use_pad_mask = Lk_p != Lk          # padded key columns must be excluded

    in_arrays = [q_p, k_p, v_p]
    in_specs = [
        pl.BlockSpec((1, TQ, D), lambda b, qi, ki: (b, qi, 0)),
        pl.BlockSpec((1, TK, D), lambda b, qi, ki: (b, ki, 0)),
        pl.BlockSpec((1, TK, Dv), lambda b, qi, ki: (b, ki, 0)),
    ]

    mask_bytes = 0
    if has_mask:
        # Accept bool / int8 masks as-is (1 B/elem stream); other dtypes get a
        # single cheap conversion.  Masks broadcastable over Lq are streamed as
        # one row per batch instead of being materialized to (B, Lq, Lk).
        if mask.dtype != jnp.int8:
            mask = (mask != 0).astype(jnp.int8)
        mask_bcast_q = (mask.shape[1] == 1)
        mask_p = pad_axis(mask, 2, Lk_p)
        if not mask_bcast_q:
            mask_p = pad_axis(mask_p, 1, Lq_p)
        in_arrays.append(mask_p)
        if mask_bcast_q:
            in_specs.append(pl.BlockSpec((1, 1, TK), lambda b, qi, ki: (b, 0, ki)))
            mask_bytes = 2 * TK
        else:
            in_specs.append(pl.BlockSpec((1, TQ, TK), lambda b, qi, ki: (b, qi, ki)))
            mask_bytes = 2 * TQ * TK

    # VMEM budget: double-buffered tiles + f32 scratch, with headroom.
    # Cap below v7x's 64 MiB physical VMEM; floor above v5e's 16 MiB scoped default.
    itemsize = jnp.dtype(compute_dtype).itemsize
    out_itemsize = jnp.dtype(orig_dtype).itemsize
    vmem_est = (2 * (TQ * D + TK * D + TK * Dv) * itemsize
                + mask_bytes
                + 2 * TQ * Dv * out_itemsize
                + (TQ * Dv + 2 * TQ) * 4)
    vmem_limit = int(min(max(2 * vmem_est, 32 << 20), 48 << 20))

    kernel = _make_kernel(
        temperature=float(temperature),
        lk=Lk,
        tk=TK,
        has_mask=has_mask,
        use_pad_mask=use_pad_mask,
    )

    out_p = pl.pallas_call(
        kernel,
        out_shape=jax.ShapeDtypeStruct((B, Lq_p, Dv), orig_dtype),
        grid_spec=pltpu.PrefetchScalarGridSpec(
            num_scalar_prefetch=0,
            grid=(B, Lq_p // TQ, Lk_p // TK),
            in_specs=in_specs,
            out_specs=pl.BlockSpec((1, TQ, Dv), lambda b, qi, ki: (b, qi, 0)),
            scratch_shapes=[
                pltpu.VMEM((TQ, 1), jnp.float32),    # running max  m
                pltpu.VMEM((TQ, 1), jnp.float32),    # running sum  l
                pltpu.VMEM((TQ, Dv), jnp.float32),   # accumulator  acc
            ],
        ),
        compiler_params=pltpu.CompilerParams(
            dimension_semantics=("parallel", "parallel", "arbitrary"),
            vmem_limit_bytes=vmem_limit,
        ),
    )(*in_arrays)

    return out_p[:, :Lq, :]


def _reference(q, k, v, mask, temperature):
    scores = jnp.einsum("bqd,bkd->bqk", q / temperature, k)
    if mask is not None:
        scores = jnp.where(mask == 0, -1.0e9, scores)
    attn = jax.nn.softmax(scores, axis=-1)
    return jnp.einsum("bqk,bkd->bqd", attn, v)


if __name__ == "__main__":
    key = jax.random.PRNGKey(0)

    # --- case 1: small shapes consistent with the module's (B, L, D) usage ---
    B, Lq, Lk, D, Dv = 2, 8, 8, 32, 32
    temperature = float(D) ** 0.5
    kq, kk, kv, km, key = jax.random.split(key, 5)
    q = jax.random.normal(kq, (B, Lq, D), dtype=jnp.float32)
    k = jax.random.normal(kk, (B, Lk, D), dtype=jnp.float32)
    v = jax.random.normal(kv, (B, Lk, Dv), dtype=jnp.float32)
    mask = (jax.random.uniform(km, (B, Lq, Lk)) > 0.2).astype(jnp.int32)

    ref = _reference(q, k, v, mask, temperature)

    # strict f32 MXU path
    out_f32 = jax.block_until_ready(
        attention(q, k, v, mask, temperature=temperature, mxu_dtype=None))
    assert jnp.allclose(out_f32, ref, atol=2e-3, rtol=2e-3), "mismatch (f32, masked)"

    # default bf16-MXU path (looser tolerance due to bf16 inputs)
    out_bf = jax.block_until_ready(attention(q, k, v, mask, temperature=temperature))
    assert jnp.allclose(out_bf, ref, atol=3e-2, rtol=3e-2), "mismatch (bf16, masked)"

    # mask=None path (no dense mask DMA at all)
    out_nm = jax.block_until_ready(
        attention(q, k, v, None, temperature=temperature, mxu_dtype=None))
    ref_nm = _reference(q, k, v, None, temperature)
    assert jnp.allclose(out_nm, ref_nm, atol=2e-3, rtol=2e-3), "mismatch (no mask)"

    # --- case 2: multi-tile grid, ragged Lq/Lk, plus an all-masked query row ---
    B2, Lq2, Lk2 = 2, 40, 160
    kq, kk, kv, km, key = jax.random.split(key, 5)
    q2 = jax.random.normal(kq, (B2, Lq2, D), dtype=jnp.float32)
    k2 = jax.random.normal(kk, (B2, Lk2, D), dtype=jnp.float32)
    v2 = jax.random.normal(kv, (B2, Lk2, Dv), dtype=jnp.float32)
    mask2 = (jax.random.uniform(km, (B2, Lq2, Lk2)) > 0.2).astype(jnp.int32)
    mask2 = mask2.at[0, 3, :].set(0)   # fully-masked row regression (uniform weights, no NaN)
    ref2 = _reference(q2, k2, v2, mask2, temperature)

    out2 = jax.block_until_ready(
        attention(q2, k2, v2, mask2, temperature=temperature, tq=16, tk=128,
                  mxu_dtype=None))
    assert jnp.allclose(out2, ref2, atol=2e-3, rtol=2e-3), "mismatch (tiled f32)"

    out2_bf = jax.block_until_ready(
        attention(q2, k2, v2, mask2, temperature=temperature, tq=16, tk=128))
    assert jnp.allclose(out2_bf, ref2, atol=3e-2, rtol=3e-2), "mismatch (tiled bf16)"

    # broadcastable key-padding mask (B, 1, Lk): only one mask row DMA'd per batch
    lens = jnp.array([100, 160])
    kp_mask = (jnp.arange(Lk2)[None, None, :] < lens[:, None, None]).astype(jnp.int8)
    ref3 = _reference(q2, k2, v2, kp_mask, temperature)
    out3 = jax.block_until_ready(
        attention(q2, k2, v2, kp_mask, temperature=temperature, tq=16, tk=128,
                  mxu_dtype=None))
    assert jnp.allclose(out3, ref3, atol=2e-3, rtol=2e-3), "mismatch (key-padding mask)"

    print("KERNEL_OK")
</pallas_src>

<mosaic_0001>
module attributes {stable_mosaic.version = 11 : i64} {
  func.func @kernel(%arg0: i32, %arg1: i32, %arg2: i32, %arg3: memref<1x8x32xf32, #tpu.memory_space<vmem>>, %arg4: memref<1x128x32xf32, #tpu.memory_space<vmem>>, %arg5: memref<1x128x32xf32, #tpu.memory_space<vmem>>, %arg6: memref<1x8x128xi8, #tpu.memory_space<vmem>>, %arg7: memref<1x8x32xf32, #tpu.memory_space<vmem>>, %arg8: memref<8x1xf32, #tpu.memory_space<vmem>>, %arg9: memref<8x1xf32, #tpu.memory_space<vmem>>, %arg10: memref<8x32xf32, #tpu.memory_space<vmem>>) attributes {dimension_semantics = [#tpu.dimension_semantics<parallel>, #tpu.dimension_semantics<parallel>, #tpu.dimension_semantics<arbitrary>], iteration_bounds = array<i64: 2, 1, 1>, scalar_prefetch = 0 : i64, scratch_operands = 3 : i64, tpu.core_type = #tpu.core_type<tc>, window_params = [{transform_indices = @transform_0, window_bounds = array<i64: 1, 8, 32>}, {transform_indices = @transform_1, window_bounds = array<i64: 1, 128, 32>}, {transform_indices = @transform_2, window_bounds = array<i64: 1, 128, 32>}, {transform_indices = @transform_3, window_bounds = array<i64: 1, 8, 128>}, {transform_indices = @transform_4, window_bounds = array<i64: 1, 8, 32>}]} {
    %c0_i32 = arith.constant 0 : i32
    %0 = arith.cmpi eq, %arg2, %c0_i32 : i32
    %1 = arith.extui %0 : i1 to i32
    %c0_i32_0 = arith.constant 0 : i32
    %2 = arith.cmpi ne, %1, %c0_i32_0 : i32
    scf.if %2 {
      %cst_33 = arith.constant -2.000000e+38 : f32
      %47 = vector.broadcast %cst_33 : f32 to vector<8x1xf32>
      %c0_34 = arith.constant 0 : index
      %c0_35 = arith.constant 0 : index
      %48 = vector.load %arg8[%c0_34, %c0_35] : memref<8x1xf32, #tpu.memory_space<vmem>>, vector<8x1xf32>
      tpu.vector_store %arg8[%c0_34, %c0_35], %47 {strides = array<i32>} : memref<8x1xf32, #tpu.memory_space<vmem>>, vector<8x1xf32>,
      %cst_36 = arith.constant 0.000000e+00 : f32
      %49 = vector.broadcast %cst_36 : f32 to vector<8x1xf32>
      %c0_37 = arith.constant 0 : index
      %c0_38 = arith.constant 0 : index
      %50 = vector.load %arg9[%c0_37, %c0_38] : memref<8x1xf32, #tpu.memory_space<vmem>>, vector<8x1xf32>
      tpu.vector_store %arg9[%c0_37, %c0_38], %49 {strides = array<i32>} : memref<8x1xf32, #tpu.memory_space<vmem>>, vector<8x1xf32>,
      %cst_39 = arith.constant 0.000000e+00 : f32
      %51 = vector.broadcast %cst_39 : f32 to vector<8x32xf32>
      %c0_40 = arith.constant 0 : index
      %c0_41 = arith.constant 0 : index
      %52 = vector.load %arg10[%c0_40, %c0_41] : memref<8x32xf32, #tpu.memory_space<vmem>>, vector<8x32xf32>
      tpu.vector_store %arg10[%c0_40, %c0_41], %51 {strides = array<i32>} : memref<8x32xf32, #tpu.memory_space<vmem>>, vector<8x32xf32>,
    } else {
    }
    %c0 = arith.constant 0 : index
    %c0_1 = arith.constant 0 : index
    %c0_2 = arith.constant 0 : index
    %3 = vector.load %arg3[%c0, %c0_1, %c0_2] : memref<1x8x32xf32, #tpu.memory_space<vmem>>, vector<1x8x32xf32>
    %4 = vector.shape_cast %3 : vector<1x8x32xf32> to vector<8x32xf32>
    %cst = arith.constant 0.176776692 : f32
    %5 = vector.broadcast %cst : f32 to vector<8x32xf32>
    %6 = arith.mulf %4, %5 : vector<8x32xf32>
    %c0_3 = arith.constant 0 : index
    %c0_4 = arith.constant 0 : index
    %c0_5 = arith.constant 0 : index
    %7 = vector.load %arg4[%c0_3, %c0_4, %c0_5] : memref<1x128x32xf32, #tpu.memory_space<vmem>>, vector<1x128x32xf32>
    %8 = vector.shape_cast %7 : vector<1x128x32xf32> to vector<128x32xf32>
    %c0_6 = arith.constant 0 : index
    %c0_7 = arith.constant 0 : index
    %c0_8 = arith.constant 0 : index
    %9 = vector.load %arg5[%c0_6, %c0_7, %c0_8] : memref<1x128x32xf32, #tpu.memory_space<vmem>>, vector<1x128x32xf32>
    %10 = vector.shape_cast %9 : vector<1x128x32xf32> to vector<128x32xf32>
    %cst_9 = arith.constant dense<0.000000e+00> : vector<8x128xf32>
    %11 = tpu.matmul %6, %8, %cst_9 {dimension_numbers = #tpu.dot_dimension_numbers<[1], [1], [0], [0], [0, 0, 1, 0], [], []>} : vector<8x32xf32>, vector<128x32xf32>, vector<8x128xf32> -> vector<8x128xf32>
    %c0_10 = arith.constant 0 : index
    %c0_11 = arith.constant 0 : index
    %c0_12 = arith.constant 0 : index
    %12 = vector.load %arg6[%c0_10, %c0_11, %c0_12] : memref<1x8x128xi8, #tpu.memory_space<vmem>>, vector<1x8x128xi8>
    %13 = vector.shape_cast %12 : vector<1x8x128xi8> to vector<8x128xi8>
    %c0_i8 = arith.constant 0 : i8
    %14 = vector.broadcast %c0_i8 : i8 to vector<8x128xi8>
    %15 = arith.cmpi ne, %13, %14 : vector<8x128xi8>
    %cst_13 = arith.constant -1.000000e+09 : f32
    %16 = vector.broadcast %cst_13 : f32 to vector<8x128xf32>
    %17 = arith.select %15, %11, %16 : vector<8x128xi1>, vector<8x128xf32>
    %c0_i32_14 = arith.constant 0 : i32
    %18 = arith.cmpi eq, %arg2, %c0_i32_14 : i32
    %19 = arith.extui %18 : i1 to i32
    %c0_i32_15 = arith.constant 0 : i32
    %20 = arith.cmpi ne, %19, %c0_i32_15 : i32
    %21 = scf.if %20 -> (vector<8x128xf32>) {
      %c128_i32 = arith.constant 128 : i32
      %47 = arith.muli %arg2, %c128_i32 : i32
      %48 = tpu.iota {dimensions = array<i32: 1>} : vector<8x128xi32>
      %49 = vector.broadcast %47 : i32 to vector<8x128xi32>
      %50 = arith.addi %49, %48 : vector<8x128xi32>
      %c8_i32 = arith.constant 8 : i32
      %51 = vector.broadcast %c8_i32 : i32 to vector<8x128xi32>
      %52 = arith.cmpi slt, %50, %51 : vector<8x128xi32>
      %cst_33 = arith.constant -2.000000e+38 : f32
      %53 = vector.broadcast %cst_33 : f32 to vector<8x128xf32>
      %54 = arith.select %52, %17, %53 : vector<8x128xi1>, vector<8x128xf32>
      scf.yield %54 : vector<8x128xf32>
    } else {
      scf.yield %17 : vector<8x128xf32>
    }
    %c0_16 = arith.constant 0 : index
    %c0_17 = arith.constant 0 : index
    %22 = vector.load %arg8[%c0_16, %c0_17] : memref<8x1xf32, #tpu.memory_space<vmem>>, vector<8x1xf32>
    %cst_18 = arith.constant dense<0xFF800000> : vector<8xf32>
    %23 = vector.multi_reduction <maximumf>, %21, %cst_18 [1] : vector<8x128xf32> to vector<8xf32>
    %24 = vector.shape_cast %23 : vector<8xf32> to vector<8x1xf32>
    %25 = arith.maximumf %22, %24 : vector<8x1xf32>
    %26 = arith.subf %22, %25 : vector<8x1xf32>
    %27 = math.exp %26 : vector<8x1xf32>
    %28 = vector.broadcast %25 : vector<8x1xf32> to vector<8x128xf32>
    %29 = arith.subf %21, %28 : vector<8x128xf32>
    %30 = math.exp %29 : vector<8x128xf32>
    %c0_19 = arith.constant 0 : index
    %c0_20 = arith.constant 0 : index
    %31 = vector.load %arg9[%c0_19, %c0_20] : memref<8x1xf32, #tpu.memory_space<vmem>>, vector<8x1xf32>
    %32 = arith.mulf %27, %31 : vector<8x1xf32>
    %cst_21 = arith.constant dense<0.000000e+00> : vector<8xf32>
    %33 = vector.multi_reduction <add>, %30, %cst_21 [1] : vector<8x128xf32> to vector<8xf32>
    %34 = vector.shape_cast %33 : vector<8xf32> to vector<8x1xf32>
    %35 = arith.addf %32, %34 : vector<8x1xf32>
    %c0_22 = arith.constant 0 : index
    %c0_23 = arith.constant 0 : index
    %36 = vector.load %arg9[%c0_22, %c0_23] : memref<8x1xf32, #tpu.memory_space<vmem>>, vector<8x1xf32>
    tpu.vector_store %arg9[%c0_22, %c0_23], %35 {strides = array<i32>} : memref<8x1xf32, #tpu.memory_space<vmem>>, vector<8x1xf32>,
    %c0_24 = arith.constant 0 : index
    %c0_25 = arith.constant 0 : index
    %37 = vector.load %arg10[%c0_24, %c0_25] : memref<8x32xf32, #tpu.memory_space<vmem>>, vector<8x32xf32>
    %38 = vector.broadcast %27 : vector<8x1xf32> to vector<8x32xf32>
    %39 = arith.mulf %38, %37 : vector<8x32xf32>
    %cst_26 = arith.constant dense<0.000000e+00> : vector<8x32xf32>
    %40 = tpu.matmul %30, %10, %cst_26 {dimension_numbers = #tpu.dot_dimension_numbers<[1], [0], [0], [1], [0, 0, 1, 1], [], []>} : vector<8x128xf32>, vector<128x32xf32>, vector<8x32xf32> -> vector<8x32xf32>
    %41 = arith.addf %39, %40 : vector<8x32xf32>
    %c0_27 = arith.constant 0 : index
    %c0_28 = arith.constant 0 : index
    %42 = vector.load %arg10[%c0_27, %c0_28] : memref<8x32xf32, #tpu.memory_space<vmem>>, vector<8x32xf32>
    tpu.vector_store %arg10[%c0_27, %c0_28], %41 {strides = array<i32>} : memref<8x32xf32, #tpu.memory_space<vmem>>, vector<8x32xf32>,
    %c0_29 = arith.constant 0 : index
    %c0_30 = arith.constant 0 : index
    %43 = vector.load %arg8[%c0_29, %c0_30] : memref<8x1xf32, #tpu.memory_space<vmem>>, vector<8x1xf32>
    tpu.vector_store %arg8[%c0_29, %c0_30], %25 {strides = array<i32>} : memref<8x1xf32, #tpu.memory_space<vmem>>, vector<8x1xf32>,
    %c0_i32_31 = arith.constant 0 : i32
    %44 = arith.cmpi eq, %arg2, %c0_i32_31 : i32
    %45 = arith.extui %44 : i1 to i32
    %c0_i32_32 = arith.constant 0 : i32
    %46 = arith.cmpi ne, %45, %c0_i32_32 : i32
    scf.if %46 {
      %c0_33 = arith.constant 0 : index
      %c0_34 = arith.constant 0 : index
      %47 = vector.load %arg9[%c0_33, %c0_34] : memref<8x1xf32, #tpu.memory_space<vmem>>, vector<8x1xf32>
      %48 = tpu.reciprocal %47 {approx = true} : vector<8x1xf32> -> vector<8x1xf32>
      %49 = arith.mulf %47, %48 : vector<8x1xf32>
      %cst_35 = arith.constant 2.000000e+00 : f32
      %50 = vector.broadcast %cst_35 : f32 to vector<8x1xf32>
      %51 = arith.subf %50, %49 : vector<8x1xf32>
      %52 = arith.mulf %48, %51 : vector<8x1xf32>
      %c0_36 = arith.constant 0 : index
      %c0_37 = arith.constant 0 : index
      %53 = vector.load %arg10[%c0_36, %c0_37] : memref<8x32xf32, #tpu.memory_space<vmem>>, vector<8x32xf32>
      %54 = vector.broadcast %52 : vector<8x1xf32> to vector<8x32xf32>
      %55 = arith.mulf %53, %54 : vector<8x32xf32>
      %c0_38 = arith.constant 0 : index
      %c0_39 = arith.constant 0 : index
      %c0_40 = arith.constant 0 : index
      %56 = vector.load %arg7[%c0_38, %c0_39, %c0_40] : memref<1x8x32xf32, #tpu.memory_space<vmem>>, vector<1x8x32xf32>
      %57 = vector.shape_cast %56 : vector<1x8x32xf32> to vector<8x32xf32>
      %58 = vector.shape_cast %55 : vector<8x32xf32> to vector<1x8x32xf32>
      tpu.vector_store %arg7[%c0_38, %c0_39, %c0_40], %58 {strides = array<i32>} : memref<1x8x32xf32, #tpu.memory_space<vmem>>, vector<1x8x32xf32>,
    } else {
    }
    return
  }
  func.func @transform_0(%arg0: i32, %arg1: i32, %arg2: i32) -> (i32, i32, i32) {
    %c0_i32 = arith.constant 0 : i32
    %c0_i32_0 = arith.constant 0 : i32
    return %arg0, %arg1, %c0_i32 : i32, i32, i32
  }
  func.func @transform_1(%arg0: i32, %arg1: i32, %arg2: i32) -> (i32, i32, i32) {
    %c0_i32 = arith.constant 0 : i32
    %c0_i32_0 = arith.constant 0 : i32
    return %arg0, %arg2, %c0_i32 : i32, i32, i32
  }
  func.func @transform_2(%arg0: i32, %arg1: i32, %arg2: i32) -> (i32, i32, i32) {
    %c0_i32 = arith.constant 0 : i32
    %c0_i32_0 = arith.constant 0 : i32
    return %arg0, %arg2, %c0_i32 : i32, i32, i32
  }
  func.func @transform_3(%arg0: i32, %arg1: i32, %arg2: i32) -> (i32, i32, i32) {
    %c0_i32 = arith.constant 0 : i32
    return %arg0, %arg1, %arg2 : i32, i32, i32
  }
  func.func @transform_4(%arg0: i32, %arg1: i32, %arg2: i32) -> (i32, i32, i32) {
    %c0_i32 = arith.constant 0 : i32
    %c0_i32_0 = arith.constant 0 : i32
    return %arg0, %arg1, %c0_i32 : i32, i32, i32
  }
}

</mosaic_0001>

<bundles_post_ra>
// kernel: tpu_custom_call.1
= control target key start
LH: loop header
LB: loop body
LE: loop exit
PB: predicated region body
PF: predicated region fallthrough
CT: control target
= control target key end

     0   :  { %9 = vsyncpa [#allocation6], 0  ;;  %s1371_s0 = inlined_call_operand.vmem [shape: f32[2,8,32], index: 0, kind: input, shape index: {}]   ;;  %s1372_s1 = inlined_call_operand.vmem [shape: f32[2,128,32], index: 1, kind: input, shape index: {}]   ;;  %s1373_s2 = inlined_call_operand.vmem [shape: f32[2,128,32], index: 2, kind: input, shape index: {}]   ;;  %s1374_s3 = inlined_call_operand.vmem [shape: s8[2,8,128], index: 3, kind: input, shape index: {}]   ;;  %s1375_s4 = inlined_call_operand.hbm [shape: f32[2,8,32], index: 4, kind: output, shape index: {}]  }
   0x1   :  { %11 = vsyncpa [#allocation6 + $0x1], 0  ;;  %s1159_s15 = smov 0   ;;  %s1161_s16 = smov 0  }
   0x2   :  { %s1163_s17 = smov 0   ;;  %s1165_s18 = smov 0  }
   0x3   :  { %s1167_s19 = smov 0   ;;  %s1169_s20 = smov 0  }
   0x4 LB: > { %s785_s21 = sadd.s32 4294967295, %s1126_s20   ;;  %s786_s22 = sadd.s32 4294967294, %s1126_s20   ;;  %s1126_s20 = sphi %s1169_s20, %s17_s20   ;;  %s1122_s19 = sphi %s1167_s19, %s1384_s19   ;;  %s1118_s18 = sphi %s1165_s18, %s1383_s18   ;;  %s1114_s17 = sphi %s1163_s17, %s1382_s17   ;;  %s1110_s16 = sphi %s1161_s16, %s1381_s16   ;;  %s1106_s15 = sphi %s1159_s15, %s1380_s15  }
   0x5   : > { %s36_s23 = sadd.s32 1, %s1122_s19  ;;  %s159_s24 = sadd.s32 1, %s1114_s17 }
   0x6   : > { %p38_p0 = scmp.ge.s32.totalorder %s36_s23, 2  ;;  %p169_p1 = scmp.ne.s32.totalorder %s1114_s17, %s1110_s16 }
   0x7   : > { %p170_p2 = scmp.eq.s32.totalorder %s785_s21, 1  ;;  %p175_p3 = scmp.ne.s32.totalorder %s1110_s16, %s1106_s15 }
   0x8   : > { %s1386_s23 = smov (%p38_p0, %s36_s23), 0  ;;  %p176_p5 = scmp.eq.s32.totalorder %s786_s22, 1 }
   0x9   : > { %p1199_p4 = por %p170_p2, %p169_p1  ;;  %s154_s26 = ssub.s32 %s1122_s19, %s1386_s23 }
   0xa   : > { %p789_p6 = scmp.ge.s32.totalorder %s1126_s20, 1  ;;  %p157_p7 = scmp.eq.s32.totalorder %s154_s26, 0 }
   0xb   : > { %p1206_p8 = por %p176_p5, %p175_p3  ;;  %p243_p9 = scmp.lt.s32.totalorder %s1126_s20, 3 }
   0xc   : > { %s1212_s28 = scalar_select %p157_p7, %s1114_s17, %s159_s24  }
   0xd   : > { %p244_p10 = pnand %p789_p6, %p243_p9 }
   0xe   : > { %p299_p11 = scmp.lt.s32.totalorder (!%p244_p10), %s1118_s18, 1  ;;  %vm345_vm0 = vcmask (!%p244_p10), 261120   ;;  %vm342_vm1 = vcmask (!%p244_p10), 7168   ;;  %v1128_v0 = vmov (!%p244_p10), 0.0|0.0   ;;  %v1129_v1 = vmov (!%p244_p10), 0.0   ;;  %s815_s5 = sshll.u32 (!%p244_p10), %s1118_s18, 7 }
   0xf   : > { %247 = sbr.rel (%p244_p10) target bundleno = 906 (0x38a), region = 36  ;;  %924 = vmatprep.subr.bf16.mxu0 (!%p244_p10), %v1128_v0  ;;  %344 = vst.msk [vmem:[#allocation3] sm:$0xff] (!%p244_p10), %vm342_vm1, %v1129_v1  ;;  %956 = vmatprep.subr.bf16.mxu1 (!%p244_p10), %v1128_v0  ;;  %vm1130_vm2 = vmmov (!%p244_p10), 0   ;;  %vm1234_vm3 = vmpackc.low (!%p244_p10), %vm345_vm0, %vm345_vm0  ;;  %v1131_v30 = vmov (!%p244_p10), 0   ;;  %v1132_v32 = vmov (!%p244_p10), -2e+38   ;;  %v513_v33 = vlaneseq (!%p244_p10)  ;;  %s1323_s10 = scalar_lea.hbm (!%p244_p10), %s1375_s4, %s815_s5 }
  0x10   : > { %346 = vst.msk [vmem:[#allocation4] sm:$0xff] (!%p244_p10), %vm345_vm0, %v1129_v1  ;;  %886 = vmatprep.mubr.msk.f32.mxu0 (!%p244_p10), %vm1130_vm2, %v1129_v1  ;;  %921 = vmatprep.mubr.msk.f32.mxu1 (!%p244_p10), %vm1130_vm2, %v1129_v1 }
  0x11   : > { %1040 = vset.pattern.permute.xlu0 (!%p244_p10), %v1131_v30  ;;  %1041 = vset.pattern.permute.xlu1 (!%p244_p10), %v1131_v30  ;;  %343 = vst.msk [vmem:[#allocation2] sm:$0xff] (!%p244_p10), %vm342_vm1, %v1132_v32  ;;  %v514_v35 = vand.u32 (!%p244_p10), 127, %v513_v33 }
  0x13   : > { %vm517_vm6 = vcmp.lt.s32.totalorder (!%p244_p10), %v514_v35, 8 }
  0x16   : > { %s1220_s29 = scalar_select %p299_p11, %s1118_s18, 1 }
  0x17   : > { %s1133_s18 = smov [#allocation5]  }
  0x18   : > { %s818_s30 = sshll.u32 %s1220_s29, 7  ;;  %s791_s8 = sshll.u32 %s1220_s29, 3  ;;  %v524_v52 = vld [vmem:[#allocation2] sm:$0xff] }
  0x19   : > { %s1228_s7 = scalar_lea.vmem %s1372_s1, %s818_s30  ;;  %s305_s11 = scalar_lea.vmem %s1371_s0, %s791_s8 }
  0x1a   : > { %v349_v2 = vld [vmem:[%s1228_s7] sm:$0xff]  ;;  %v350_v3 = vld [vmem:[%s1228_s7 + $0x8] sm:$0xff]  ;;  %v351_v6 = vld [vmem:[%s1228_s7 + $0x10] sm:$0xff]  ;;  %s796_s12 = sshll.u32 %s1220_s29, 1  ;;  %s1290_s26 = scalar_lea.vmem %s1373_s2, %s818_s30 }
  0x1b   : > { %v925_v5 = vpack.c.bf16 %v350_v3, %v349_v2  ;;  %v352_v7 = vld [vmem:[%s1228_s7 + $0x18] sm:$0xff]  ;;  %v353_v9 = vld [vmem:[%s1228_s7 + $0x20] sm:$0xff]  ;;  %v354_v10 = vld [vmem:[%s1228_s7 + $0x28] sm:$0xff]  ;;  %s335_s21 = scalar_lea.vmem %s1374_s3, %s796_s12  ;;  %s296_s29 = sand.u32 1, %s1110_s16  }
  0x1c   : > { %v929_v8 = vpack.c.bf16 %v352_v7, %v351_v6  ;;  %v933_v11 = vpack.c.bf16 %v354_v10, %v353_v9  ;;  %v355_v12 = vld [vmem:[%s1228_s7 + $0x30] sm:$0xff]  ;;  %v356_v13 = vld [vmem:[%s1228_s7 + $0x38] sm:$0xff]  ;;  %v357_v15 = vld [vmem:[%s1228_s7 + $0x40] sm:$0xff]  ;;  %s790_s30 = sshll.u32 %s296_s29, 3  ;;  %s1052_s13 = sshll.u32 %s1133_s18, 4  ;;  %s1053_s13 = int_to_ptr.vmem [resolvable:$false] %s1052_s13 }
  0x1d   : > { %927 = vmatpush3.bf16.xpose.msk.msra.mxu0 %vm1234_vm3, %v925_v5  ;;  %v937_v14 = vpack.c.bf16 %v356_v13, %v355_v12  ;;  %v358_v16 = vld [vmem:[%s1228_s7 + $0x48] sm:$0xff]  ;;  %v359_v18 = vld [vmem:[%s1228_s7 + $0x50] sm:$0xff]  ;;  %v360_v19 = vld [vmem:[%s1228_s7 + $0x58] sm:$0xff]  ;;  %s298_s6 = scalar_lea.vmem [#allocation5], %s790_s30  ;;  %s1054_s14 = scalar_lea.vmem %s1053_s13, 256 }
  0x1e   : > { %928 = vmatprep.subr.bf16.mxu0 %v1128_v0  ;;  %v941_v17 = vpack.c.bf16 %v358_v16, %v357_v15  ;;  %v945_v20 = vpack.c.bf16 %v360_v19, %v359_v18  ;;  %v361_v21 = vld [vmem:[%s1228_s7 + $0x60] sm:$0xff]  ;;  %v362_v22 = vld [vmem:[%s1228_s7 + $0x68] sm:$0xff]  ;;  %v363_v24 = vld [vmem:[%s1228_s7 + $0x70] sm:$0xff] }
  0x1f   : > { %v949_v23 = vpack.c.bf16 %v362_v22, %v361_v21  ;;  %v364_v25 = vld [vmem:[%s1228_s7 + $0x78] sm:$0xff]  ;;  %v347_v27 = vld [vmem:[%s305_s11] sm:$0xff]  ;;  %v366_v41 = vld [vmem:[%s1290_s26 + $0x8] sm:$0xff]  ;;  %s657_s7 = sshll.u32 %s298_s6, 4  ;;  %s643_s11 = scalar_lea.sflag [#allocation6], %s296_s29  ;;  %s1325_s7 = int_to_ptr.vmem [resolvable:$true] %s657_s7 }
  0x20   : > { %v953_v26 = vpack.c.bf16 %v364_v25, %v363_v24  ;;  %v348_v28 = vmul.f32 0.17677669, %v347_v27  ;;  %v503_v29 = vld [vmem:[%s335_s21] sm:$0x3]  ;;  %v367_v42 = vld [vmem:[%s1290_s26 + $0x10] sm:$0xff]  ;;  %v368_v44 = vld [vmem:[%s1290_s26 + $0x18] sm:$0xff]  ;;  %p1055_p1 = scmp.lt.s32.totalorder %s1325_s7, %s1053_s13 }
  0x21   : > { %vm504_vm4 = vnez %v503_v29  ;;  %v365_v40 = vld [vmem:[%s1290_s26] sm:$0xff]  ;;  %v960_v45 = vpack.c.bf16 %v368_v44, %v367_v42  ;;  %v370_v47 = vld [vmem:[%s1290_s26 + $0x28] sm:$0xff]  ;;  %v371_v49 = vld [vmem:[%s1290_s26 + $0x30] sm:$0xff]  ;;  %s1048_s12 = scalar_lea.vmem %s1325_s7, 128 }
  0x22   : > { %v505_v31 = vsel %vm504_vm4, 16843009, %v1131_v30  ;;  %v957_v43 = vpack.c.bf16 %v366_v41, %v365_v40  ;;  %v369_v46 = vld [vmem:[%s1290_s26 + $0x20] sm:$0xff]  ;;  %v372_v50 = vld [vmem:[%s1290_s26 + $0x38] sm:$0xff]  ;;  %v374_v55 = vld [vmem:[%s1290_s26 + $0x48] sm:$0xff]  ;;  %p1049_p12 = scmp.ne.s32.totalorder %s1325_s7, %s1048_s12  ;;  %p1056_p2 = scmp.lt.s32.totalorder %s1054_s14, %s1048_s12 }
  0x23   : > { %v506_v34 = vunpack.c.0.s8 %v505_v31  ;;  %v963_v48 = vpack.c.bf16 %v370_v47, %v369_v46  ;;  %v966_v51 = vpack.c.bf16 %v372_v50, %v371_v49  ;;  %v373_v54 = vld [vmem:[%s1290_s26 + $0x40] sm:$0xff]  ;;  %v375_v59 = vld [vmem:[%s1290_s26 + $0x50] sm:$0xff]  ;;  %v376_v60 = vld [vmem:[%s1290_s26 + $0x58] sm:$0xff] }
  0x24   : > { %958 = vmatpush3.bf16.msra.mxu1 %v957_v43  ;;  %v969_v57 = vpack.c.bf16 %v374_v55, %v373_v54  ;;  %v972_v61 = vpack.c.bf16 %v376_v60, %v375_v59  ;;  %v377_v62 = vld [vmem:[%s1290_s26 + $0x60] sm:$0xff]  ;;  %v378_v63 = vld [vmem:[%s1290_s26 + $0x68] sm:$0xff]  ;;  %v379_v2 = vld [vmem:[%s1290_s26 + $0x70] sm:$0xff]  ;;  %p1050_p13 = pnand %p1049_p12, %p1199_p4  ;;  %p1057_p3 = por %p1056_p2, %p1055_p1 }
  0x25   : > { %931 = vmatpush3.bf16.xpose.msk.msra.mxu0 %vm1234_vm3, %v929_v8  ;;  %vm507_vm5 = vcmp.ne.s32.totalorder %v506_v34, 0  ;;  %959 = vmatprep.subr.bf16.mxu1 %v1128_v0  ;;  %v975_v1 = vpack.c.bf16 %v378_v63, %v377_v62  ;;  %v380_v3 = vld [vmem:[%s1290_s26 + $0x78] sm:$0xff]  ;;  %v546_v19 = vld [vmem:[#allocation4] sm:$0xff] }
  0x26   : > { %932 = vmatprep.subr.bf16.mxu0 %v1128_v0  ;;  %v978_v4 = vpack.c.bf16 %v380_v3, %v379_v2  ;;  %p1051_p0 = pneg %p1050_p13 }
  0x28   : > { %961 = vmatpush3.bf16.msra.mxu1 %v960_v45  ;;  %p1058_p5 = pnand %p1057_p3, %p1051_p0 }
  0x29   : > { %962 = vmatprep.subr.bf16.mxu1 %v1128_v0 }
  0x2c   : > { %964 = vmatpush3.bf16.msra.mxu1 %v963_v48 }
  0x2d   : > { %935 = vmatpush3.bf16.xpose.msk.msra.mxu0 %vm1234_vm3, %v933_v11  ;;  %965 = vmatprep.subr.bf16.mxu1 %v1128_v0  ;;  %v539_v11 = vld [vmem:[#allocation3] sm:$0xff] }
  0x2e   : > { %936 = vmatprep.subr.bf16.mxu0 %v1128_v0 }
  0x30   : > { %967 = vmatpush3.bf16.msra.mxu1 %v966_v51 }
  0x31   : > { %968 = vmatprep.subr.bf16.mxu1 %v1128_v0 }
  0x34   : > { %970 = vmatpush3.bf16.msra.mxu1 %v969_v57 }
  0x35   : > { %939 = vmatpush3.bf16.xpose.msk.msra.mxu0 %vm1234_vm3, %v937_v14  ;;  %971 = vmatprep.subr.bf16.mxu1 %v1128_v0 }
  0x36   : > { %940 = vmatprep.subr.bf16.mxu0 %v1128_v0 }
  0x38   : > { %973 = vmatpush3.bf16.msra.mxu1 %v972_v61 }
  0x39   : > { %974 = vmatprep.subr.bf16.mxu1 %v1128_v0 }
  0x3c   : > { %976 = vmatpush3.bf16.msra.mxu1 %v975_v1 }
  0x3d   : > { %943 = vmatpush3.bf16.xpose.msk.msra.mxu0 %vm1234_vm3, %v941_v17  ;;  %977 = vmatprep.subr.bf16.mxu1 %v1128_v0 }
  0x3e   : > { %944 = vmatprep.subr.bf16.mxu0 %v1128_v0 }
  0x40   : > { %979 = vmatpush3.bf16.msra.mxu1 %v978_v4 }
  0x45   : > { %947 = vmatpush3.bf16.xpose.msk.msra.mxu0 %vm1234_vm3, %v945_v20 }
  0x46   : > { %948 = vmatprep.subr.bf16.mxu0 %v1128_v0 }
  0x4d   : > { %951 = vmatpush3.bf16.xpose.msk.msra.mxu0 %vm1234_vm3, %v949_v23 }
  0x4e   : > { %952 = vmatprep.subr.bf16.mxu0 %v1128_v0 }
  0x55   : > { %955 = vmatpush3.bf16.xpose.msk.msra.mxu0 %vm1234_vm3, %v953_v26 }
  0x5c   : > { %887 = vmatmul.mubr.msk.f32.vlgmr.msra.gmra.mrb[0].mxu0 %vm345_vm0, %v348_v28 }
 0x12f   : > { %v499_v36 = vpop.f32.mrb[0].mxu0 }
 0x130   : > { %v508_v37 = vsel %vm507_vm5, %v499_v36, -1e+09  ;;  %v888_v38 = vpop.f32.mrb[1].mxu0 }
 0x131   : > { %v518_v39 = vsel %vm517_vm6, %v508_v37, -2e+38 }
 0x132   : > { %525 = vmax.xlane.f32.xlu0 %v518_v39 }
 0x1bf   : > { %v526_v53 = vpop.xlane.xlu0 %525 }
 0x1c0   : > { %v527_v56 = vmax.f32 %v524_v52, %v526_v53 }
 0x1c2   : > { %v528_v58 = vsub.f32 %v524_v52, %v527_v56  ;;  %625 = vst.msk [vmem:[#allocation2] sm:$0xff] %vm342_vm1, %v527_v56  ;;  %533 = vperm.xlu0 %1040, %v527_v56  }
 0x1c4   : > { %v529_v9 = vmul.f32 1.442695, %v528_v58 }
 0x241   : > { %v534_v5 = vpop.permute.xlu0 %533 }
 0x242   : > { %v536_v6 = vsub.f32 %v518_v39, %v534_v5 }
 0x244   : > { %v537_v7 = vmul.f32 1.442695, %v536_v6 }
 0x246   : > { %1042 = vpow2.f32 %v537_v7 }
 0x247   : > { %1044 = vpow2.f32 %v529_v9 }
 0x250   : > { %v1043_v8 = vpop.eup %1042 }
 0x251   : > { %541 = vadd.xlane.f32.xlu1 %v1043_v8  ;;  %922 = vmatmul.mubr.f32.vlgmr.msra.gmra.mrb[0].mxu1 %v1043_v8  ;;  %v1045_v10 = vpop.eup %1044 }
 0x252   : > { %v540_v12 = vmul.f32 %v1045_v10, %v539_v11 }
 0x262   : > { %549 = vperm.xlu1 %1041, %v1045_v10  }
 0x2de   : > { %v542_v13 = vpop.xlane.xlu1 %541 }
 0x2df   : > { %v543_v14 = vadd.f32 %v542_v13, %v540_v12 }
 0x2e1   : > { %545 = vst.msk [vmem:[#allocation3] sm:$0xff] %vm342_vm1, %v543_v14 }
 0x2e2   : > { %v550_v20 = vpop.permute.xlu1 %549 }
 0x2e3   : > { %v552_v21 = vmul.f32 %v550_v20, %v546_v19 }
 0x2e8   : > { %v629_v0 = vld [vmem:[#allocation3] sm:$0xff] }
 0x2e9   : > { %1046 = vrcp.f32 %v629_v0 }
 0x2f3   : > { %v1047_v15 = vpop.eup %1046 }
 0x2f4   : > { %v631_v16 = vmul.f32 %v1047_v15, %v629_v0 }
 0x2f6   : > { %v632_v17 = vsub.f32 2.0, %v631_v16 }
 0x2f8   : > { %v633_v18 = vmul.f32 %v1047_v15, %v632_v17 }
 0x2fa   : > { %637 = vperm.xlu1 %1041, %v633_v18  }
 0x324   : > { %v619_v22 = vpop.f32.mrb[0].mxu1 }
 0x325   : > { %v623_v23 = vadd.f32 %v619_v22, %v552_v21  ;;  %v923_v24 = vpop.f32.mrb[1].mxu1 }
 0x327   : > { %624 = vst.msk [vmem:[#allocation4] sm:$0xff] %vm345_vm0, %v623_v23 }
 0x32e   : > { %v634_v25 = vld [vmem:[#allocation4] sm:$0xff] }
 0x379   : > { %v638_v26 = vpop.permute.xlu1 %637 }
 0x37a   : > { %v640_v27 = vmul.f32 %v638_v26, %v634_v25 }
 0x37c   : > { %641 = vst.msk [vmem:[%s298_s6] sm:$0xff] %vm345_vm0, %v640_v27 }
 0x37d   : > { %1061 = shalt.err (!%p1058_p5)
}
 0x37e   : > { %s1062_s21 = scalar_lea.hbm %s1323_s10, 128  ;;  %s1066_s26 = scalar_lea.hbm %s1375_s4, 256 }
 0x37f   : > { %p1063_p6 = scmp.ne.s32.totalorder %s1323_s10, %s1062_s21  ;;  %p1067_p10 = scmp.lt.u32.totalorder %s1323_s10, %s1375_s4 }
 0x380   : > { %p1068_p11 = scmp.lt.u32.totalorder %s1066_s26, %s1062_s21  ;;  %p1070_p13 = scmp.lt.u32.totalorder %s1062_s21, %s1323_s10 }
 0x381   : > { %p1064_p7 = pnand %p1063_p6, %p1199_p4 }
 0x382   : > { %p1069_p12 = por %p1068_p11, %p1067_p10 }
 0x383   : > { %p1065_p9 = pneg %p1064_p7 }
 0x384   : > { %p1071_p0 = por %p1070_p13, %p1069_p12 }
 0x386   : > { %p1072_p1 = pnand %p1071_p0, %p1065_p9 }
 0x388   : > { %1075 = shalt.err (!%p1072_p1)
}
 0x389   : > { %980 = dma.vmem_to_hbm [thread:$0]  (%p1199_p4), %s1325_s7, 128, %s1323_s10, %s643_s11  }
 0x38a PF: > { %p986_p2 = scmp.ge.s32.totalorder %s1126_s20, 2  ;;  %s669_s5 = sand.u32 1, %s1106_s15  }
 0x38b   : > { %s670_s6 = scalar_lea.sflag [#allocation6], %s669_s5 }
 0x38c   : > { %p983_p3 = pnand %p986_p2, %p1206_p8 }
 0x38e   : > { %1101 = dma.done.wait (!%p983_p3), %s670_s6, 128  }
 0x38f   : > { %1103 = vsyncadd (!%p983_p3), %s670_s6, 4294967168  ;;  %s17_s20 = sadd.s32 1, %s1126_s20   ;;  %s1380_s15 = smov %s1110_s16 }
 0x390   : > { %p14_p5 = scmp.ge.s32.totalorder %s17_s20, 4   ;;  %s1381_s16 = smov %s1114_s17 }
 0x391   : > { %s1382_s17 = smov %s1212_s28  ;;  %s1383_s18 = smov %s1122_s19 }
 0x392   : > { %s1384_s19 = smov %s1386_s23  ;;  %16 = sbr.rel (!%p14_p5) target bundleno = 4 (0x4), region = 96 }
 0x399   :  { %675 = vsyncpa [#allocation6], 1 }
 0x39a   :  { %677 = vsyncpa [#allocation6 + $0x1], 1 }

</bundles_post_ra>
